<compile_context>
chip_gen: v6e
topology: v6e:2x2x1
jax: 0.10.0
libtpu: 0.0.40
codegen_flags: <defaults>
</compile_context>

<pallas_src>
import jax
import jax.numpy as jnp
from jax.experimental import pallas as pl
from jax.experimental.pallas import tpu as pltpu

KH = 5        # kernel height
STRIDE_H = 3  # stride along H
PAD = 2       # PyTorch padding=2 on both H and W


def _round_up(a, b):
    return (a + b - 1) // b * b


def _vmem_caps():
    """Per-generation (tiling budget, scoped vmem limit) in bytes."""
    try:
        cap = pltpu.get_tpu_info().vmem_capacity_bytes
    except Exception:  # non-TPU trace / older runtime: assume the smallest (v7x 64 MiB/TC)
        cap = 64 * 1024 * 1024
    budget = min(cap * 3 // 8, 96 * 1024 * 1024)   # 48 MiB on v5e/v6e, 24 MiB on v7x
    limit = min(cap // 2, 96 * 1024 * 1024)        # 64 MiB on v5e/v6e, 32 MiB on v7x
    return budget, limit


def _conv_block_kernel(x_ref, w_ref, b_ref, o_ref):
    """One grid step == one (batch, W-group, h-tile) output tile.

    x_ref: (1, 3, th+1, Wg*Cin)   residue-class input window (auto-pipelined)
    w_ref: (KH*Wg*Cin, Wg*Cout_p) group-block-diagonal weights (constant)
    b_ref: (1, Wg*Cout_p)         bias tiled over the W group (constant)
    o_ref: (1, th, Wg*Cout_p)     output tile; lane dim == 128 -> dense stores
    """
    th = o_ref.shape[1]
    # Padded input row 3*ho + kh lives in residue class kh % 3 at index ho + kh // 3, so
    # all five taps are contiguous sublane slices of the pre-split window (no stride-3 reads).
    taps = [
        x_ref[0, 0, 0:th, :],        # kh = 0
        x_ref[0, 1, 0:th, :],        # kh = 1
        x_ref[0, 2, 0:th, :],        # kh = 2
        x_ref[0, 0, 1:th + 1, :],    # kh = 3
        x_ref[0, 1, 1:th + 1, :],    # kh = 4
    ]
    # One deep matmul (contraction = KH*Wg*Cin) instead of 5 shallow accumulated ones.
    lhs = jnp.concatenate(taps, axis=-1)
    acc = jnp.dot(lhs, w_ref[...], preferred_element_type=jnp.float32)
    o_ref[0, :, :] = jnp.maximum(acc + b_ref[...], 0.0).astype(o_ref.dtype)


def conv_block_forward(x, v, g, b, *, compute_dtype=jnp.float32):
    """Forward of ConvBlock: weight_norm(Conv2d(k=(5,1), s=(3,1), p=2)) + ReLU.

    x: (N, Cin, H, W); v: (Cout, Cin, 5, 1); g: (Cout,); b: (Cout,)
    returns (N, Cout, Hout, Wout) matching PyTorch NCHW semantics.
    """
    N, Cin, H, W = x.shape
    Cout, Cin2, kh_, kw_ = v.shape
    assert Cin2 == Cin and kh_ == KH and kw_ == 1

    # ---- weight_norm (parameter prep, plain JAX): w = g * v / ||v||, norm over (1,2,3) ----
    v32 = v.astype(jnp.float32)
    v_norm = jnp.sqrt(jnp.sum(v32 * v32, axis=(1, 2, 3), keepdims=True))
    w = g.reshape(Cout, 1, 1, 1).astype(jnp.float32) * v32 / v_norm       # (Cout, Cin, KH, 1)

    # ---- output spatial dims (PyTorch Conv2d, padding=2, kernel (5,1), stride (3,1)) ----
    Hout = (H + 2 * PAD - KH) // STRIDE_H + 1
    Wout = W + 2 * PAD                         # kernel width 1, padding 2
    Wp = Wout

    # ---- W grouping so the output lane dim is exactly 128 (dense, unmasked stores) ----
    if Cout >= 128:
        Cout_p, Wg = _round_up(Cout, 128), 1
    else:
        Cout_p = 1 << (Cout - 1).bit_length()  # next power of two
        Wg = 128 // Cout_p
    G = (Wp + Wg - 1) // Wg
    Wp_pad = G * Wg
    lane_in = Wg * Cin
    lane_out = Wg * Cout_p                     # == 128 for Cout < 128

    # ---- h-tile size from the VMEM budget (cap 256 rows: keeps the f32 accumulator in vregs) ----
    budget, vmem_limit = _vmem_caps()
    itemsize = jnp.dtype(compute_dtype).itemsize
    fixed = 2 * KH * lane_in * lane_out * itemsize + 2 * lane_out * 4     # weights + bias buffers
    per_row = 2 * 3 * lane_in * itemsize + 2 * lane_out * 4               # input + output buffers
    th = max(1, (budget - fixed) // per_row)
    th = int(min(th, 256, _round_up(Hout, 8)))
    th = max(8, th // 8 * 8)
    n_h = (Hout + th - 1) // th
    Hout_pad = n_h * th
    Hc = Hout_pad + 1                    # rows per residue class
    Hp_pad = STRIDE_H * Hc               # padded input rows

    # ---- channels-last, zero-padded input, split into h-residue classes and W groups ----
    # (pure transpose/reshape/pad: gather-free, no data amplification)
    x_cl = jnp.transpose(x, (0, 2, 3, 1)).astype(compute_dtype)           # (N, H, W, Cin)
    x_cl = jnp.pad(x_cl, ((0, 0), (PAD, Hp_pad - H - PAD),
                          (PAD, Wp_pad - W - PAD), (0, 0)))
    # padded row hp = 3*j + r -> class r, index j; lanes = (w_local, cin)
    xcls = x_cl.reshape(N, Hc, STRIDE_H, G, Wg, Cin)
    xcls = jnp.transpose(xcls, (0, 3, 2, 1, 4, 5))                        # (N, G, 3, Hc, Wg, Cin)
    xcls = xcls.reshape(N * G, STRIDE_H, Hc, lane_in)

    # ---- per-tile windows: tile i needs class rows [i*th, i*th + th] (1-row overlap). ----
    # For n_h == 1 this is a pure reshape (zero duplication); for n_h > 1 the duplication is
    # a single row per class per tile (~(th+1)/th).
    # TODO(synk): for very large Hout, a manual double-buffered DMA straight from `xcls`
    # would avoid even that tiny duplication (at the cost of a sequential grid).
    if n_h == 1:
        xwin = xcls
    else:
        xwin = jnp.stack(
            [xcls[:, :, i * th:i * th + th + 1, :] for i in range(n_h)], axis=1)
    xwin = xwin.reshape(N * G * n_h, STRIDE_H, th + 1, lane_in)

    # ---- group-block-diagonal weights, built directly (no kron over the full Wp) ----
    w_k = jnp.transpose(w[:, :, :, 0], (2, 1, 0))                          # (KH, Cin, Cout)
    w_k = jnp.pad(w_k, ((0, 0), (0, 0), (0, Cout_p - Cout)))
    eye_g = jnp.eye(Wg, dtype=jnp.float32)
    wcat = jnp.einsum('uv,kcd->kucvd', eye_g, w_k)                         # (KH, Wg, Cin, Wg, Cout_p)
    wcat = wcat.reshape(KH * lane_in, lane_out).astype(compute_dtype)
    bias_row = jnp.tile(jnp.pad(b.astype(jnp.float32), (0, Cout_p - Cout)), Wg)
    bias_row = bias_row.reshape(1, lane_out)

    S = N * G * n_h
    out3d = pl.pallas_call(
        _conv_block_kernel,
        out_shape=jax.ShapeDtypeStruct((S, th, lane_out), x.dtype),
        grid_spec=pltpu.PrefetchScalarGridSpec(
            num_scalar_prefetch=0,
            grid=(S,),
            in_specs=[
                pl.BlockSpec((1, STRIDE_H, th + 1, lane_in), lambda s: (s, 0, 0, 0)),
                pl.BlockSpec((KH * lane_in, lane_out), lambda s: (0, 0)),
                pl.BlockSpec((1, lane_out), lambda s: (0, 0)),
            ],
            out_specs=pl.BlockSpec((1, th, lane_out), lambda s: (s, 0, 0)),
        ),
        compiler_params=pltpu.CompilerParams(
            dimension_semantics=("parallel",),
            vmem_limit_bytes=int(vmem_limit),
        ),
    )(xwin, wcat, bias_row)

    # ---- un-fold (batch, W-group, h-tile), slice off padding, back to NCHW ----
    out = out3d.reshape(N, G, n_h, th, Wg, Cout_p)
    out = jnp.transpose(out, (0, 2, 3, 1, 4, 5)).reshape(N, Hout_pad, Wp_pad, Cout_p)
    out = out[:, :Hout, :Wout, :Cout]
    # TODO(synk): if the downstream consumer accepts channels-last, drop this transpose.
    return jnp.transpose(out, (0, 3, 1, 2))


if __name__ == "__main__":
    key = jax.random.PRNGKey(0)
    k1, k2, k3, k4 = jax.random.split(key, 4)

    N, Cin, H, W = 2, 4, 16, 16
    Cout = 8
    x = jax.random.normal(k1, (N, Cin, H, W), jnp.float32)
    v = jax.random.normal(k2, (Cout, Cin, 5, 1), jnp.float32) * 0.1
    g = jax.random.uniform(k3, (Cout,), jnp.float32, minval=0.5, maxval=1.5)
    b = jax.random.normal(k4, (Cout,), jnp.float32) * 0.1

    y = jax.jit(conv_block_forward)(x, v, g, b)
    jax.block_until_ready(y)

    # pure-JAX reference (lax conv) for a correctness cross-check
    v_norm = jnp.sqrt(jnp.sum(v ** 2, axis=(1, 2, 3), keepdims=True))
    w_ref = g.reshape(Cout, 1, 1, 1) * v / v_norm
    ref = jax.lax.conv_general_dilated(
        x, w_ref, window_strides=(3, 1), padding=((2, 2), (2, 2)),
        dimension_numbers=("NCHW", "OIHW", "NCHW"))
    ref = jnp.maximum(ref + b.reshape(1, Cout, 1, 1), 0.0)

    assert y.shape == ref.shape, (y.shape, ref.shape)
    assert jnp.allclose(y, ref, atol=1e-4, rtol=1e-4), float(jnp.max(jnp.abs(y - ref)))
    print("KERNEL_OK")
</pallas_src>

<mosaic_0001>
module attributes {stable_mosaic.version = 11 : i64} {
  func.func @_conv_block_kernel(%arg0: i32, %arg1: memref<1x3x9x64xf32, #tpu.memory_space<vmem>>, %arg2: memref<320x128xf32, #tpu.memory_space<vmem>>, %arg3: memref<1x128xf32, #tpu.memory_space<vmem>>, %arg4: memref<1x8x128xf32, #tpu.memory_space<vmem>>) attributes {dimension_semantics = [#tpu.dimension_semantics<parallel>], iteration_bounds = array<i64: 4>, scalar_prefetch = 0 : i64, scratch_operands = 0 : i64, tpu.core_type = #tpu.core_type<tc>, window_params = [{transform_indices = @transform_0, window_bounds = array<i64: 1, 3, 9, 64>}, {pipeline_mode = #tpu.pipeline_mode<synchronous>, transform_indices = @transform_1, window_bounds = array<i64: 320, 128>}, {pipeline_mode = #tpu.pipeline_mode<synchronous>, transform_indices = @transform_2, window_bounds = array<i64: 1, 128>}, {transform_indices = @transform_3, window_bounds = array<i64: 1, 8, 128>}]} {
    %c0 = arith.constant 0 : index
    %c0_0 = arith.constant 0 : index
    %c0_1 = arith.constant 0 : index
    %c0_2 = arith.constant 0 : index
    %0 = vector.load %arg1[%c0, %c0_0, %c0_1, %c0_2] : memref<1x3x9x64xf32, #tpu.memory_space<vmem>>, vector<1x1x8x64xf32>
    %1 = vector.shape_cast %0 : vector<1x1x8x64xf32> to vector<8x64xf32>
    %c0_3 = arith.constant 0 : index
    %c1 = arith.constant 1 : index
    %c0_4 = arith.constant 0 : index
    %c0_5 = arith.constant 0 : index
    %2 = vector.load %arg1[%c0_3, %c1, %c0_4, %c0_5] : memref<1x3x9x64xf32, #tpu.memory_space<vmem>>, vector<1x1x8x64xf32>
    %3 = vector.shape_cast %2 : vector<1x1x8x64xf32> to vector<8x64xf32>
    %c0_6 = arith.constant 0 : index
    %c2 = arith.constant 2 : index
    %c0_7 = arith.constant 0 : index
    %c0_8 = arith.constant 0 : index
    %4 = vector.load %arg1[%c0_6, %c2, %c0_7, %c0_8] : memref<1x3x9x64xf32, #tpu.memory_space<vmem>>, vector<1x1x8x64xf32>
    %5 = vector.shape_cast %4 : vector<1x1x8x64xf32> to vector<8x64xf32>
    %c0_9 = arith.constant 0 : index
    %c0_10 = arith.constant 0 : index
    %c1_11 = arith.constant 1 : index
    %c0_12 = arith.constant 0 : index
    %6 = vector.load %arg1[%c0_9, %c0_10, %c1_11, %c0_12] : memref<1x3x9x64xf32, #tpu.memory_space<vmem>>, vector<1x1x8x64xf32>
    %7 = vector.shape_cast %6 : vector<1x1x8x64xf32> to vector<8x64xf32>
    %c0_13 = arith.constant 0 : index
    %c1_14 = arith.constant 1 : index
    %c1_15 = arith.constant 1 : index
    %c0_16 = arith.constant 0 : index
    %8 = vector.load %arg1[%c0_13, %c1_14, %c1_15, %c0_16] : memref<1x3x9x64xf32, #tpu.memory_space<vmem>>, vector<1x1x8x64xf32>
    %9 = vector.shape_cast %8 : vector<1x1x8x64xf32> to vector<8x64xf32>
    %10 = tpu.concatenate %1, %3, %5, %7, %9 in 1 : vector<8x64xf32>, vector<8x64xf32>, vector<8x64xf32>, vector<8x64xf32>, vector<8x64xf32> -> vector<8x320xf32>
    %c0_17 = arith.constant 0 : index
    %c0_18 = arith.constant 0 : index
    %11 = vector.load %arg2[%c0_17, %c0_18] : memref<320x128xf32, #tpu.memory_space<vmem>>, vector<320x128xf32>
    %cst = arith.constant dense<0.000000e+00> : vector<8x128xf32>
    %12 = tpu.matmul %10, %11, %cst {dimension_numbers = #tpu.dot_dimension_numbers<[1], [0], [0], [1], [0, 0, 1, 1], [], []>} : vector<8x320xf32>, vector<320x128xf32>, vector<8x128xf32> -> vector<8x128xf32>
    %c0_19 = arith.constant 0 : index
    %c0_20 = arith.constant 0 : index
    %13 = vector.load %arg3[%c0_19, %c0_20] : memref<1x128xf32, #tpu.memory_space<vmem>>, vector<1x128xf32>
    %14 = vector.broadcast %13 : vector<1x128xf32> to vector<8x128xf32>
    %15 = arith.addf %12, %14 : vector<8x128xf32>
    %cst_21 = arith.constant 0.000000e+00 : f32
    %16 = vector.broadcast %cst_21 : f32 to vector<8x128xf32>
    %17 = arith.maximumf %15, %16 : vector<8x128xf32>
    %c0_22 = arith.constant 0 : index
    %c0_23 = arith.constant 0 : index
    %c0_24 = arith.constant 0 : index
    %18 = vector.load %arg4[%c0_22, %c0_23, %c0_24] : memref<1x8x128xf32, #tpu.memory_space<vmem>>, vector<1x8x128xf32>
    %19 = vector.shape_cast %18 : vector<1x8x128xf32> to vector<8x128xf32>
    %20 = vector.shape_cast %17 : vector<8x128xf32> to vector<1x8x128xf32>
    tpu.vector_store %arg4[%c0_22, %c0_23, %c0_24], %20 {strides = array<i32>} : memref<1x8x128xf32, #tpu.memory_space<vmem>>, vector<1x8x128xf32>,
    return
  }
  func.func @transform_0(%arg0: i32) -> (i32, i32, i32, i32) {
    %c0_i32 = arith.constant 0 : i32
    %c0_i32_0 = arith.constant 0 : i32
    %c0_i32_1 = arith.constant 0 : i32
    %c0_i32_2 = arith.constant 0 : i32
    return %arg0, %c0_i32, %c0_i32_0, %c0_i32_1 : i32, i32, i32, i32
  }
  func.func @transform_1(%arg0: i32) -> (i32, i32) {
    %c0_i32 = arith.constant 0 : i32
    %c0_i32_0 = arith.constant 0 : i32
    %c0_i32_1 = arith.constant 0 : i32
    return %c0_i32, %c0_i32_0 : i32, i32
  }
  func.func @transform_2(%arg0: i32) -> (i32, i32) {
    %c0_i32 = arith.constant 0 : i32
    %c0_i32_0 = arith.constant 0 : i32
    %c0_i32_1 = arith.constant 0 : i32
    return %c0_i32, %c0_i32_0 : i32, i32
  }
  func.func @transform_3(%arg0: i32) -> (i32, i32, i32) {
    %c0_i32 = arith.constant 0 : i32
    %c0_i32_0 = arith.constant 0 : i32
    %c0_i32_1 = arith.constant 0 : i32
    return %arg0, %c0_i32, %c0_i32_0 : i32, i32, i32
  }
}

</mosaic_0001>

<bundles_post_ra>
// kernel: tile.8
= control target key start
LH: loop header
LB: loop body
LE: loop exit
PB: predicated region body
PF: predicated region fallthrough
CT: control target
= control target key end

     0   :  { %s28_s0 = inlined_call_operand.vmem [shape: f32[8], index: 0, kind: input, shape index: {}]   ;;  %s29_s1 = inlined_call_operand.vmem [shape: f32[16,8], index: 1, kind: output, shape index: {}]  }
   0x1   :  { %v4_v0 = vld [vmem:[%s28_s0] ss:$0 sm:$0xff] }
   0x2   :  { %5 = vst [vmem:[%s29_s1] sm:$0xff] %v4_v0  ;;  %8 = vst [vmem:[%s29_s1 + $0x8] sm:$0xff] %v4_v0 }

// kernel: tile.9
= control target key start
LH: loop header
LB: loop body
LE: loop exit
PB: predicated region body
PF: predicated region fallthrough
CT: control target
= control target key end

     0   :  { %s133_s10 = smov 120   ;;  %s134_s11 = smov 104   ;;  %vm3_vm0 = vcmask 64512   ;;  %vm9_vm1 = vcmask 1048512   ;;  %vm15_vm2 = vcmask 982912   ;;  %vm21_vm3 = vcmask 917312   ;;  %s209_s0 = inlined_call_operand.vmem [shape: f32[16,8], index: 0, kind: input, shape index: {}]   ;;  %s210_s1 = inlined_call_operand.vmem [shape: f32[1,128], index: 1, kind: output, shape index: {}]  }
   0x1   :  { %v103_v0 = vld [vmem:[%s209_s0 + $0xf] sm:$0x1]   ;;  %v105_v1 = vld [vmem:[%s209_s0 + $0xd] sm:$0x1]   ;;  %v104_v2 = vld [vmem:[%s209_s0 + $0xe] sm:$0x1]  }
   0x2   :  { %7 = vrot.lane.b32.xlu0 %v103_v0, %s133_s10  ;;  %19 = vrot.lane.b32.xlu1 %v105_v1, %s134_s11  ;;  %v106_v3 = vld [vmem:[%s209_s0 + $0xc] sm:$0x1]   ;;  %s135_s16 = smov 112   ;;  %s136_s17 = smov 96   ;;  %v107_v4 = vld [vmem:[%s209_s0 + $0xb] sm:$0x1]  }
   0x3   :  { %v108_v5 = vld [vmem:[%s209_s0 + $0xa] sm:$0x1]   ;;  %v2_v6 = vld [vmem:[%s209_s0] sm:$0x1]   ;;  %s137_s24 = smov 88   ;;  %s138_s25 = smov 80  }
   0x4   :  { %4 = vst.msk [vmem:[#allocation0] sm:$0x1] %vm3_vm0, %v2_v6   ;;  %v109_v7 = vld [vmem:[%s209_s0 + $0x9] sm:$0x1]   ;;  %v110_v8 = vld [vmem:[%s209_s0 + $0x8] sm:$0x1]  }
   0x5   :  { %s139_s30 = smov 72   ;;  %s140_s2 = smov 64   ;;  %v111_v9 = vld [vmem:[%s209_s0 + $0x7] sm:$0x1]   ;;  %v112_v10 = vld [vmem:[%s209_s0 + $0x6] sm:$0x1]  }
   0x6   :  { %13 = vrot.lane.b32.xlu0 %v104_v2, %s135_s16  ;;  %25 = vrot.lane.b32.xlu1 %v106_v3, %s136_s17  ;;  %s141_s7 = smov 56   ;;  %s142_s8 = smov 48   ;;  %v113_v11 = vld [vmem:[%s209_s0 + $0x5] sm:$0x1]   ;;  %v114_v12 = vld [vmem:[%s209_s0 + $0x4] sm:$0x1]  }
   0x7   :  { %s143_s13 = smov 40   ;;  %s144_s14 = smov 32   ;;  %v115_v13 = vld [vmem:[%s209_s0 + $0x3] sm:$0x1]   ;;  %v116_v14 = vld [vmem:[%s209_s0 + $0x2] sm:$0x1]  }
   0x8   :  { %s145_s19 = smov 24   ;;  %s146_s20 = smov 16   ;;  %v117_v15 = vld [vmem:[%s209_s0 + $0x1] sm:$0x1]   ;;  %vm27_vm4 = vcmask 851712   ;;  %vm33_vm5 = vcmask 786112  }
   0x9   :  { %s147_s0 = smov 8   ;;  %vm39_vm6 = vcmask 720512   ;;  %vm45_vm7 = vcmask 654912   ;;  %vm51_vm8 = vcmask 589312   ;;  %vm57_vm9 = vcmask 523712  }
   0xa   :  { %31 = vrot.lane.b32.xlu0 %v107_v4, %s137_s24  ;;  %37 = vrot.lane.b32.xlu1 %v108_v5, %s138_s25  ;;  %vm63_vm10 = vcmask 458112   ;;  %vm69_vm11 = vcmask 392512   ;;  %vm75_vm12 = vcmask 326912   ;;  %vm81_vm13 = vcmask 261312  }
   0xb   :  { %vm87_vm14 = vcmask 195712   ;;  %vm93_vm15 = vcmask 130112  }
   0xe   :  { %43 = vrot.lane.b32.xlu0 %v109_v7, %s139_s30  ;;  %49 = vrot.lane.b32.xlu1 %v110_v8, %s140_s2 }
  0x12   :  { %55 = vrot.lane.b32.xlu0 %v111_v9, %s141_s7  ;;  %61 = vrot.lane.b32.xlu1 %v112_v10, %s142_s8 }
  0x16   :  { %67 = vrot.lane.b32.xlu0 %v113_v11, %s143_s13  ;;  %73 = vrot.lane.b32.xlu1 %v114_v12, %s144_s14 }
  0x1a   :  { %79 = vrot.lane.b32.xlu0 %v115_v13, %s145_s19  ;;  %85 = vrot.lane.b32.xlu1 %v116_v14, %s146_s20 }
  0x1e   :  { %91 = vrot.lane.b32.xlu0 %v117_v15, %s147_s0 }
  0x74   :  { %v8_v16 = vpop.permute.xlu0 %7   ;;  %v20_v17 = vpop.permute.xlu1 %19  }
  0x75   :  { %10 = vst.msk [vmem:[#allocation0] sm:$0x1] %vm9_vm1, %v8_v16  }
  0x78   :  { %v14_v18 = vpop.permute.xlu0 %13   ;;  %v26_v19 = vpop.permute.xlu1 %25  }
  0x79   :  { %16 = vst.msk [vmem:[#allocation0] sm:$0x1] %vm15_vm2, %v14_v18  }
  0x7a   :  { %22 = vst.msk [vmem:[#allocation0] sm:$0x1] %vm21_vm3, %v20_v17  }
  0x7b   :  { %28 = vst.msk [vmem:[#allocation0] sm:$0x1] %vm27_vm4, %v26_v19  }
  0x7c   :  { %v32_v20 = vpop.permute.xlu0 %31   ;;  %v38_v21 = vpop.permute.xlu1 %37  }
  0x7d   :  { %34 = vst.msk [vmem:[#allocation0] sm:$0x1] %vm33_vm5, %v32_v20  }
  0x7e   :  { %40 = vst.msk [vmem:[#allocation0] sm:$0x1] %vm39_vm6, %v38_v21  }
  0x80   :  { %v44_v22 = vpop.permute.xlu0 %43   ;;  %v50_v23 = vpop.permute.xlu1 %49  }
  0x81   :  { %46 = vst.msk [vmem:[#allocation0] sm:$0x1] %vm45_vm7, %v44_v22  }
  0x82   :  { %52 = vst.msk [vmem:[#allocation0] sm:$0x1] %vm51_vm8, %v50_v23  }
  0x84   :  { %v56_v24 = vpop.permute.xlu0 %55   ;;  %v62_v25 = vpop.permute.xlu1 %61  }
  0x85   :  { %58 = vst.msk [vmem:[#allocation0] sm:$0x1] %vm57_vm9, %v56_v24  }
  0x86   :  { %64 = vst.msk [vmem:[#allocation0] sm:$0x1] %vm63_vm10, %v62_v25  }
  0x88   :  { %v68_v26 = vpop.permute.xlu0 %67   ;;  %v74_v27 = vpop.permute.xlu1 %73  }
  0x89   :  { %70 = vst.msk [vmem:[#allocation0] sm:$0x1] %vm69_vm11, %v68_v26  }
  0x8a   :  { %76 = vst.msk [vmem:[#allocation0] sm:$0x1] %vm75_vm12, %v74_v27  }
  0x8c   :  { %v80_v28 = vpop.permute.xlu0 %79   ;;  %v86_v29 = vpop.permute.xlu1 %85  }
  0x8d   :  { %82 = vst.msk [vmem:[#allocation0] sm:$0x1] %vm81_vm13, %v80_v28  }
  0x8e   :  { %88 = vst.msk [vmem:[#allocation0] sm:$0x1] %vm87_vm14, %v86_v29  }
  0x90   :  { %v92_v30 = vpop.permute.xlu0 %91  }
  0x91   :  { %94 = vst.msk [vmem:[#allocation0] sm:$0x1] %vm93_vm15, %v92_v30  }
  0x98   :  { %v99_v31 = vld [vmem:[#allocation0] sm:$0x1] }
  0x99   :  { %102 = vst [vmem:[%s210_s1] sm:$0x1] %v99_v31 }

// kernel: conv_block_forward.1
= control target key start
LH: loop header
LB: loop body
LE: loop exit
PB: predicated region body
PF: predicated region fallthrough
CT: control target
= control target key end

     0   :  { %s557_s12 = smov 0   ;;  %s720_s0 = inlined_call_operand.vmem [shape: f32[4,3,9,64], index: 0, kind: input, shape index: {}]   ;;  %s721_s1 = inlined_call_operand.vmem [shape: f32[320,128], index: 1, kind: input, shape index: {}]   ;;  %s722_s2 = inlined_call_operand.vmem [shape: f32[1,128], index: 2, kind: input, shape index: {}]   ;;  %s723_s3 = inlined_call_operand.vmem [shape: f32[4,8,128], index: 3, kind: output, shape index: {}]  }
   0x1 LB: > { %s432_s13 = sadd.s32 4294967295, %s532_s12   ;;  %p436_p0 = scmp.ge.s32.totalorder %s532_s12, 1  ;;  %s532_s12 = sphi %s557_s12, %s13_s12  }
   0x2   : > { %p137_p1 = scmp.lt.s32.totalorder %s532_s12, 5 }
   0x4   : > { %p138_p2 = pnand %p436_p0, %p137_p1 }
   0x5   : > { %p160_p3 = scmp.lt.s32.totalorder (!%p138_p2), %s432_s13, 3  ;;  %s536_s21 = smov (!%p138_p2), 64  }
   0x6   : > { %141 = sbr.rel (%p138_p2) target bundleno = 341 (0x155), region = 32 }
   0xb   : > { %v218_v0 = vld [vmem:[%s721_s1 + $0xf8] sm:$0xff]  ;;  %v217_v2 = vld [vmem:[%s721_s1 + $0xf0] sm:$0xff]  ;;  %v534_v4 = vmov 0.0   ;;  %s725_s13 = smov (!%p160_p3, %s432_s13), 3  ;;  %v216_v5 = vld [vmem:[%s721_s1 + $0xe8] sm:$0xff]  ;;  %vm535_vm0 = vmmov 0  }
   0xc   : > { %v202_v1 = vld [vmem:[%s721_s1 + $0x78] sm:$0xff]  ;;  %446 = vmatprep.subr.mxu0 %v218_v0  ;;  %v201_v3 = vld [vmem:[%s721_s1 + $0x70] sm:$0xff]  ;;  %490 = vmatprep.subr.mxu1 %v534_v4  ;;  %v200_v6 = vld [vmem:[%s721_s1 + $0x68] sm:$0xff]  ;;  %s509_s26 = smul.u32 48, %s725_s13  ;;  %vm184_vm1 = vcmask 523264   ;;  %s438_s28 = sshll.u32 %s725_s13, 3 }
   0xd   : > { %447 = vmatpush3.msra.mxu0 %v202_v1  ;;  %506 = vmatprep.mubr.msk.f32.mxu1 %vm535_vm0, %v534_v4  ;;  %v215_v7 = vld [vmem:[%s721_s1 + $0xe0] sm:$0xff]  ;;  %v214_v9 = vld [vmem:[%s721_s1 + $0xd8] sm:$0xff]  ;;  %v213_v14 = vld [vmem:[%s721_s1 + $0xd0] sm:$0xff]  ;;  %s168_s30 = scalar_lea.vmem %s723_s3, %s438_s28 }
   0xe   : > { %448 = vmatprep.subr.mxu0 %v217_v2  ;;  %v199_v8 = vld [vmem:[%s721_s1 + $0x60] sm:$0xff]  ;;  %s597_s6 = scalar_lea.vmem %s720_s0, %s509_s26  ;;  %v198_v12 = vld [vmem:[%s721_s1 + $0x58] sm:$0xff]  ;;  %v197_v16 = vld [vmem:[%s721_s1 + $0x50] sm:$0xff] }
   0xf   : > { %449 = vmatpush3.msra.mxu0 %v201_v3  ;;  %v439_v10 = vld [vmem:[%s597_s6 + $0x10] sm:$0xff]  ;;  %v174_v11 = vld [vmem:[%s597_s6 + $0x1] sm:$0xff]  ;;  %v226_v15 = vld [vmem:[%s721_s1 + $0x138] sm:$0xff] }
  0x10   : > { %450 = vmatprep.subr.mxu0 %v216_v5  ;;  %v521_v13 = vpack.i.bf16 %v439_v10, %v174_v11  ;;  %491 = vmatpush3.msra.mxu1 %v226_v15  ;;  %v225_v17 = vld [vmem:[%s721_s1 + $0x130] sm:$0xff]  ;;  %v212_v18 = vld [vmem:[%s721_s1 + $0xc8] sm:$0xff]  ;;  %v211_v21 = vld [vmem:[%s721_s1 + $0xc0] sm:$0xff] }
  0x11   : > { %451 = vmatpush3.msra.mxu0 %v200_v6  ;;  %v196_v19 = vld [vmem:[%s721_s1 + $0x48] sm:$0xff]  ;;  %492 = vmatprep.subr.mxu1 %v534_v4  ;;  %v195_v22 = vld [vmem:[%s721_s1 + $0x40] sm:$0xff]  ;;  %v210_v24 = vld [vmem:[%s721_s1 + $0xb8] sm:$0xff] }
  0x12   : > { %452 = vmatprep.subr.mxu0 %v215_v7  ;;  %522 = vrot.lane.b32.xlu0 %v521_v13, %s536_s21  ;;  %v224_v20 = vld [vmem:[%s721_s1 + $0x128] sm:$0xff]  ;;  %v223_v23 = vld [vmem:[%s721_s1 + $0x120] sm:$0xff]  ;;  %v194_v25 = vld [vmem:[%s721_s1 + $0x38] sm:$0xff] }
  0x13   : > { %453 = vmatpush3.msra.mxu0 %v199_v8  ;;  %493 = vmatpush3.msra.mxu1 %v225_v17  ;;  %v222_v26 = vld [vmem:[%s721_s1 + $0x118] sm:$0xff]  ;;  %v209_v27 = vld [vmem:[%s721_s1 + $0xb0] sm:$0xff]  ;;  %v208_v30 = vld [vmem:[%s721_s1 + $0xa8] sm:$0xff] }
  0x14   : > { %454 = vmatprep.subr.mxu0 %v214_v9  ;;  %494 = vmatprep.subr.mxu1 %v534_v4  ;;  %v193_v28 = vld [vmem:[%s721_s1 + $0x30] sm:$0xff]  ;;  %v192_v31 = vld [vmem:[%s721_s1 + $0x28] sm:$0xff]  ;;  %v207_v33 = vld [vmem:[%s721_s1 + $0xa0] sm:$0xff] }
  0x15   : > { %455 = vmatpush3.msra.mxu0 %v198_v12  ;;  %495 = vmatpush3.msra.mxu1 %v224_v20  ;;  %v221_v29 = vld [vmem:[%s721_s1 + $0x110] sm:$0xff]  ;;  %v220_v32 = vld [vmem:[%s721_s1 + $0x108] sm:$0xff]  ;;  %v191_v34 = vld [vmem:[%s721_s1 + $0x20] sm:$0xff] }
  0x16   : > { %456 = vmatprep.subr.mxu0 %v213_v14  ;;  %496 = vmatprep.subr.mxu1 %v534_v4  ;;  %v219_v35 = vld [vmem:[%s721_s1 + $0x100] sm:$0xff]  ;;  %v206_v36 = vld [vmem:[%s721_s1 + $0x98] sm:$0xff]  ;;  %v205_v39 = vld [vmem:[%s721_s1 + $0x90] sm:$0xff] }
  0x17   : > { %457 = vmatpush3.msra.mxu0 %v197_v16  ;;  %497 = vmatpush3.msra.mxu1 %v223_v23  ;;  %v441_v37 = vld [vmem:[%s597_s6 + $0x11] sm:$0xff]  ;;  %v204_v41 = vld [vmem:[%s721_s1 + $0x88] sm:$0xff]  ;;  %v203_v43 = vld [vmem:[%s721_s1 + $0x80] sm:$0xff] }
  0x18   : > { %458 = vmatprep.subr.mxu0 %v212_v18  ;;  %498 = vmatprep.subr.mxu1 %v534_v4  ;;  %v190_v38 = vld [vmem:[%s721_s1 + $0x18] sm:$0xff]  ;;  %v189_v40 = vld [vmem:[%s721_s1 + $0x10] sm:$0xff]  ;;  %v188_v42 = vld [vmem:[%s721_s1 + $0x8] sm:$0xff] }
  0x19   : > { %459 = vmatpush3.msra.mxu0 %v196_v19  ;;  %499 = vmatpush3.msra.mxu1 %v222_v26  ;;  %v187_v44 = vld [vmem:[%s721_s1] sm:$0xff] }
  0x1a   : > { %460 = vmatprep.subr.mxu0 %v211_v21  ;;  %500 = vmatprep.subr.mxu1 %v534_v4  ;;  %v440_v46 = vld [vmem:[%s597_s6 + $0x20] sm:$0xff] }
  0x1b   : > { %461 = vmatpush3.msra.mxu0 %v195_v22  ;;  %501 = vmatpush3.msra.mxu1 %v221_v29  ;;  %v169_v47 = vld [vmem:[%s597_s6] sm:$0xff] }
  0x1c   : > { %462 = vmatprep.subr.mxu0 %v210_v24  ;;  %502 = vmatprep.subr.mxu1 %v534_v4  ;;  %v442_v56 = vld [vmem:[%s722_s2] ss:$0 sm:$0xff] }
  0x1d   : > { %463 = vmatpush3.msra.mxu0 %v194_v25  ;;  %503 = vmatpush3.msra.mxu1 %v220_v32 }
  0x1e   : > { %464 = vmatprep.subr.mxu0 %v209_v27  ;;  %504 = vmatprep.subr.mxu1 %v534_v4 }
  0x1f   : > { %465 = vmatpush3.msra.mxu0 %v193_v28  ;;  %505 = vmatpush3.msra.mxu1 %v219_v35 }
  0x20   : > { %466 = vmatprep.subr.mxu0 %v208_v30  ;;  %507 = vmatmul.mubr.msk.f32.vlgmr.msra.gmra.mxu1 %vm184_vm1, %v441_v37 }
  0x21   : > { %467 = vmatpush3.msra.mxu0 %v192_v31 }
  0x22   : > { %468 = vmatprep.subr.mxu0 %v207_v33 }
  0x23   : > { %469 = vmatpush3.msra.mxu0 %v191_v34 }
  0x24   : > { %470 = vmatprep.subr.mxu0 %v206_v36 }
  0x25   : > { %471 = vmatpush3.msra.mxu0 %v190_v38 }
  0x26   : > { %472 = vmatprep.subr.mxu0 %v205_v39 }
  0x27   : > { %473 = vmatpush3.msra.mxu0 %v189_v40 }
  0x28   : > { %474 = vmatprep.subr.mxu0 %v204_v41 }
  0x29   : > { %475 = vmatpush3.msra.mxu0 %v188_v42 }
  0x2a   : > { %476 = vmatprep.subr.mxu0 %v203_v43 }
  0x2b   : > { %477 = vmatpush3.msra.mxu0 %v187_v44 }
  0x84   : > { %v523_v45 = vpop.permute.xlu0 %522 }
  0x85   : > { %v525_v48 = vunpack.i.h.bf16 %v523_v45  ;;  %v524_v49 = vunpack.i.l.bf16 %v523_v45 }
  0x87   : > { %v186_v50 = vsel %vm184_vm1, %v440_v46, %v524_v49  ;;  %v185_v51 = vsel %vm184_vm1, %v169_v47, %v525_v48 }
  0x88   : > { %301 = vmatprep.mubr.f32.mxu0 %v186_v50 }
  0x89   : > { %302 = vmatmul.mubr.f32.vlgmr.msra.gmra.mxu0 %v185_v51 }
  0xe0   : > { %v373_v52 = vpop.f32.mrf.mxu1 }
  0xe2   : > { %v508_v53 = vpop.f32.mrf.mxu1 }
 0x149   : > { %v478_v54 = vpop.f32.mrf.mxu0 }
 0x14b   : > { %v479_v55 = vpop.f32.mrf.mxu0 }
 0x14c   : > { %v480_v57 = vadd.f32 %v479_v55, %v478_v54 }
 0x14e   : > { %v304_v58 = vadd.f32 %v480_v57, %v442_v56 }
 0x150   : > { %v374_v59 = vadd.f32 %v373_v52, %v304_v58 }
 0x152   : > { %v377_v60 = vmax.f32 %v374_v59, 0.0 }
 0x154   : > { %378 = vst [vmem:[%s168_s30] sm:$0xff] %v377_v60 }
 0x155 PF: > { %s13_s12 = sadd.s32 1, %s532_s12  }
 0x156   : > { %p10_p4 = scmp.ge.s32.totalorder %s13_s12, 6  }
 0x158   :  { %12 = sbr.rel (!%p10_p4) target bundleno = 1 (0x1), region = 64 }

</bundles_post_ra>
